<compile_context>
chip_gen: v5e
topology: v5e:2x2
jax: 0.10.0
libtpu: 0.0.40
codegen_flags: <defaults>
</compile_context>

<pallas_src>
import functools

import jax
import jax.numpy as jnp
from jax.experimental import pallas as pl
from jax.experimental.pallas import tpu as pltpu


def _sat_readout_kernel(seg_ref, invn_ref, pos_ref, neg_ref,
                        w1p_ref, w1n_ref, b1_ref, w2_ref, b2_ref,
                        w3_ref, b3_ref, o_ref, acc_p_ref, acc_n_ref,
                        *, n_total):
    """Streams one tile of literal embeddings into per-graph mean accumulators;
    runs the MLP + sigmoid on the final grid step."""
    i = pl.program_id(0)

    @pl.when(i == 0)
    def _init():
        acc_p_ref[...] = jnp.zeros_like(acc_p_ref)
        acc_n_ref[...] = jnp.zeros_like(acc_n_ref)

    tile_n = pos_ref.shape[0]
    nb = acc_p_ref.shape[0]
    row0 = i * tile_n

    # Validity masks for the (possibly partial) last tile — no host-side pad.
    valid_col = (row0 + jax.lax.broadcasted_iota(jnp.int32, (1, tile_n), 1)) < n_total
    valid_row = (row0 + jax.lax.broadcasted_iota(jnp.int32, (tile_n, 1), 0)) < n_total

    # Membership weights: weights[b, r] = 1/num_vars[b] if row r belongs to
    # graph b (and is in range) else 0.  Built fully in-register.
    seg = seg_ref[...]                                               # (1, tile_n) i32
    gids = jax.lax.broadcasted_iota(jnp.int32, (nb, tile_n), 0)
    member = jnp.logical_and(seg == gids, valid_col)                 # (nb, tile_n)
    weights = jnp.where(member, invn_ref[...], 0.0)                  # (nb, tile_n) f32

    # Zero out-of-range rows so the MXU never multiplies garbage (0 * NaN).
    pos = jnp.where(valid_row, pos_ref[...], 0.0)
    neg = jnp.where(valid_row, neg_ref[...], 0.0)

    # Segment mean accumulated across tiles: (nb, tile) @ (tile, emb) on MXU.
    acc_p_ref[...] += jnp.dot(weights, pos, preferred_element_type=jnp.float32)
    acc_n_ref[...] += jnp.dot(weights, neg, preferred_element_type=jnp.float32)

    @pl.when(i == pl.num_programs(0) - 1)
    def _finalize():
        # concat([pool_pos, pool_neg]) @ W1 == pool_pos @ W1_top + pool_neg @ W1_bot.
        h = (jnp.dot(acc_p_ref[...], w1p_ref[...], preferred_element_type=jnp.float32)
             + jnp.dot(acc_n_ref[...], w1n_ref[...], preferred_element_type=jnp.float32)
             + b1_ref[...])
        h = jnp.maximum(h, 0.0)
        h = jnp.dot(h, w2_ref[...], preferred_element_type=jnp.float32) + b2_ref[...]
        h = jnp.maximum(h, 0.0)
        # Final Linear(emb -> 1): VPU multiply + lane reduction, not a 1-wide matmul.
        logit = jnp.sum(h * w3_ref[...], axis=-1, keepdims=True) + b3_ref[...]
        o_ref[...] = jax.nn.sigmoid(logit).astype(o_ref.dtype)


@functools.partial(jax.jit, static_argnames=("tile_n",))
def satisfiability_readout(l_pos_emb, l_neg_emb, num_variables, params, tile_n=1024):
    """Pallas implementation of SatisfiabilityReadout.forward (lcg/lig path).

    Args:
      l_pos_emb: [N, emb] f32 positive-literal embeddings.
      l_neg_emb: [N, emb] f32 negative-literal embeddings.
      num_variables: [B] int32 variables per graph in the batch (sums to N).
      params: dict with w1 [2*emb, emb], b1 [1, emb], w2 [emb, emb], b2 [1, emb],
              w3 [1, emb] (row form of Linear(emb,1).weight), b3 [1, 1].
      tile_n: rows streamed per grid step (rounded down to a multiple of 128).

    Returns:
      [B] f32 per-graph satisfiability scores (== sigmoid(mlp(pool)).squeeze(-1)).
    """
    n, emb = l_pos_emb.shape
    nb = num_variables.shape[0]

    # Tile choice: full array if it fits in one block, otherwise a multiple of
    # 128 so the (1, tile) segment-id block satisfies the lane-tiling rule.
    if n <= tile_n:
        tile = n
    else:
        tile = max(128, (tile_n // 128) * 128)
    grid = pl.cdiv(n, tile)

    seg = jnp.repeat(jnp.arange(nb, dtype=jnp.int32), num_variables,
                     total_repeat_length=n).reshape(1, n)
    inv_n = (1.0 / num_variables.astype(jnp.float32)).reshape(nb, 1)

    w1 = params["w1"]
    w1p, w1n = w1[:emb, :], w1[emb:, :]          # fuse the concat via W1 split
    b1, w2, b2 = params["b1"], params["w2"], params["b2"]
    w3, b3 = params["w3"], params["b3"]

    full = lambda a: pl.BlockSpec(a.shape, lambda i: (0, 0))

    flops = 4 * n * nb * emb + 6 * nb * emb * emb + 4 * nb * emb
    bytes_accessed = 4 * (2 * n * emb + n + 2 * nb + 3 * emb * emb + 3 * emb + 1)

    out = pl.pallas_call(
        functools.partial(_sat_readout_kernel, n_total=n),
        out_shape=jax.ShapeDtypeStruct((nb, 1), jnp.float32),
        grid_spec=pltpu.PrefetchScalarGridSpec(
            num_scalar_prefetch=0,
            grid=(grid,),
            in_specs=[
                pl.BlockSpec((1, tile), lambda i: (0, i)),      # segment ids
                full(inv_n),                                    # 1 / num_variables
                pl.BlockSpec((tile, emb), lambda i: (i, 0)),    # pos literal emb tile
                pl.BlockSpec((tile, emb), lambda i: (i, 0)),    # neg literal emb tile
                full(w1p), full(w1n), full(b1),
                full(w2), full(b2),
                full(w3), full(b3),
            ],
            out_specs=pl.BlockSpec((nb, 1), lambda i: (0, 0)),
            scratch_shapes=[pltpu.VMEM((nb, emb), jnp.float32),
                            pltpu.VMEM((nb, emb), jnp.float32)],
        ),
        compiler_params=pltpu.CompilerParams(
            dimension_semantics=("arbitrary",)),   # reduction onto resident acc/out
        cost_estimate=pl.CostEstimate(
            flops=flops, transcendentals=nb, bytes_accessed=bytes_accessed),
    )(seg, inv_n, l_pos_emb, l_neg_emb, w1p, w1n, b1, w2, b2, w3, b3)

    return out[:, 0]   # squeeze(-1)


def init_params(key, emb_size):
    """Deterministic synthetic weights for MLP(2*emb, emb, 1, num_layer=3)."""
    v_emb = 2 * emb_size
    ks = jax.random.split(key, 6)

    def u(k, shape, fan_in):
        s = 1.0 / jnp.sqrt(float(fan_in))
        return jax.random.uniform(k, shape, jnp.float32, -s, s)

    return {
        "w1": u(ks[0], (v_emb, emb_size), v_emb),
        "b1": u(ks[1], (1, emb_size), v_emb),
        "w2": u(ks[2], (emb_size, emb_size), emb_size),
        "b2": u(ks[3], (1, emb_size), emb_size),
        "w3": u(ks[4], (1, emb_size), emb_size),   # Linear(emb, 1).weight as a row
        "b3": u(ks[5], (1, 1), emb_size),
    }


def reference(l_pos, l_neg, num_vars, p):
    """Pure-JAX reference matching the PyTorch forward."""
    n, _ = l_pos.shape
    nb = num_vars.shape[0]
    v = jnp.concatenate([l_pos, l_neg], axis=1)
    seg = jnp.repeat(jnp.arange(nb), num_vars, total_repeat_length=n)
    onehot = (seg[:, None] == jnp.arange(nb)[None, :]).astype(jnp.float32)
    pooled = (onehot.T @ v) / num_vars.astype(jnp.float32)[:, None]
    h = jnp.maximum(pooled @ p["w1"] + p["b1"], 0.0)
    h = jnp.maximum(h @ p["w2"] + p["b2"], 0.0)
    logit = jnp.sum(h * p["w3"], axis=-1, keepdims=True) + p["b3"]
    return jax.nn.sigmoid(logit)[:, 0]


if __name__ == "__main__":
    emb_size = 32
    num_variables = jnp.array([96, 120, 88], dtype=jnp.int32)   # 3 graphs, N = 304
    n = int(num_variables.sum())

    key = jax.random.PRNGKey(0)
    k_pos, k_neg, k_par = jax.random.split(key, 3)
    l_pos = jax.random.normal(k_pos, (n, emb_size), jnp.float32)
    l_neg = jax.random.normal(k_neg, (n, emb_size), jnp.float32)
    params = init_params(k_par, emb_size)

    ref = reference(l_pos, l_neg, num_variables, params)

    # Multi-tile path: grid = 3, partial last tile masked inside the kernel.
    out = jax.block_until_ready(
        satisfiability_readout(l_pos, l_neg, num_variables, params, tile_n=128))
    assert out.shape == (num_variables.shape[0],)
    assert jnp.allclose(out, ref, atol=1e-5, rtol=1e-5), "mismatch (tiled) vs reference"

    # Default large-tile path (single block here since N < 1024).
    out2 = jax.block_until_ready(
        satisfiability_readout(l_pos, l_neg, num_variables, params))
    assert jnp.allclose(out2, ref, atol=1e-5, rtol=1e-5), "mismatch (default) vs reference"

    print("KERNEL_OK")
</pallas_src>

<mosaic_0001>
module attributes {stable_mosaic.version = 11 : i64} {
  func.func @_sat_readout_kernel(%arg0: i32, %arg1: memref<1x128xi32, #tpu.memory_space<vmem>>, %arg2: memref<3x1xf32, #tpu.memory_space<vmem>>, %arg3: memref<128x32xf32, #tpu.memory_space<vmem>>, %arg4: memref<128x32xf32, #tpu.memory_space<vmem>>, %arg5: memref<32x32xf32, #tpu.memory_space<vmem>>, %arg6: memref<32x32xf32, #tpu.memory_space<vmem>>, %arg7: memref<1x32xf32, #tpu.memory_space<vmem>>, %arg8: memref<32x32xf32, #tpu.memory_space<vmem>>, %arg9: memref<1x32xf32, #tpu.memory_space<vmem>>, %arg10: memref<1x32xf32, #tpu.memory_space<vmem>>, %arg11: memref<1x1xf32, #tpu.memory_space<vmem>>, %arg12: memref<3x1xf32, #tpu.memory_space<vmem>>, %arg13: memref<3x32xf32, #tpu.memory_space<vmem>>, %arg14: memref<3x32xf32, #tpu.memory_space<vmem>>) attributes {dimension_semantics = [#tpu.dimension_semantics<arbitrary>], iteration_bounds = array<i64: 3>, scalar_prefetch = 0 : i64, scratch_operands = 2 : i64, tpu.core_type = #tpu.core_type<tc>, window_params = [{transform_indices = @transform_0, window_bounds = array<i64: 1, 128>}, {pipeline_mode = #tpu.pipeline_mode<synchronous>, transform_indices = @transform_1, window_bounds = array<i64: 3, 1>}, {transform_indices = @transform_2, window_bounds = array<i64: 128, 32>}, {transform_indices = @transform_3, window_bounds = array<i64: 128, 32>}, {pipeline_mode = #tpu.pipeline_mode<synchronous>, transform_indices = @transform_4, window_bounds = array<i64: 32, 32>}, {pipeline_mode = #tpu.pipeline_mode<synchronous>, transform_indices = @transform_5, window_bounds = array<i64: 32, 32>}, {pipeline_mode = #tpu.pipeline_mode<synchronous>, transform_indices = @transform_6, window_bounds = array<i64: 1, 32>}, {pipeline_mode = #tpu.pipeline_mode<synchronous>, transform_indices = @transform_7, window_bounds = array<i64: 32, 32>}, {pipeline_mode = #tpu.pipeline_mode<synchronous>, transform_indices = @transform_8, window_bounds = array<i64: 1, 32>}, {pipeline_mode = #tpu.pipeline_mode<synchronous>, transform_indices = @transform_9, window_bounds = array<i64: 1, 32>}, {pipeline_mode = #tpu.pipeline_mode<synchronous>, transform_indices = @transform_10, window_bounds = array<i64: 1, 1>}, {pipeline_mode = #tpu.pipeline_mode<synchronous>, transform_indices = @transform_11, window_bounds = array<i64: 3, 1>}]} {
    %c0_i32 = arith.constant 0 : i32
    %0 = arith.cmpi eq, %arg0, %c0_i32 : i32
    %1 = arith.extui %0 : i1 to i32
    %c0_i32_0 = arith.constant 0 : i32
    %2 = arith.cmpi ne, %1, %c0_i32_0 : i32
    scf.if %2 {
      %cst_22 = arith.constant 0.000000e+00 : f32
      %46 = vector.broadcast %cst_22 : f32 to vector<3x32xf32>
      %c0_23 = arith.constant 0 : index
      %c0_24 = arith.constant 0 : index
      %47 = vector.load %arg13[%c0_23, %c0_24] : memref<3x32xf32, #tpu.memory_space<vmem>>, vector<3x32xf32>
      tpu.vector_store %arg13[%c0_23, %c0_24], %46 {strides = array<i32>} : memref<3x32xf32, #tpu.memory_space<vmem>>, vector<3x32xf32>,
      %cst_25 = arith.constant 0.000000e+00 : f32
      %48 = vector.broadcast %cst_25 : f32 to vector<3x32xf32>
      %c0_26 = arith.constant 0 : index
      %c0_27 = arith.constant 0 : index
      %49 = vector.load %arg14[%c0_26, %c0_27] : memref<3x32xf32, #tpu.memory_space<vmem>>, vector<3x32xf32>
      tpu.vector_store %arg14[%c0_26, %c0_27], %48 {strides = array<i32>} : memref<3x32xf32, #tpu.memory_space<vmem>>, vector<3x32xf32>,
    } else {
    }
    %c128_i32 = arith.constant 128 : i32
    %3 = arith.muli %arg0, %c128_i32 : i32
    %4 = tpu.iota {dimensions = array<i32: 1>} : vector<1x128xi32>
    %5 = vector.broadcast %3 : i32 to vector<1x128xi32>
    %6 = arith.addi %5, %4 : vector<1x128xi32>
    %c304_i32 = arith.constant 304 : i32
    %7 = vector.broadcast %c304_i32 : i32 to vector<1x128xi32>
    %8 = arith.cmpi slt, %6, %7 : vector<1x128xi32>
    %9 = tpu.iota {dimensions = array<i32: 0>} : vector<128x1xi32>
    %10 = vector.broadcast %3 : i32 to vector<128x1xi32>
    %11 = arith.addi %10, %9 : vector<128x1xi32>
    %c304_i32_1 = arith.constant 304 : i32
    %12 = vector.broadcast %c304_i32_1 : i32 to vector<128x1xi32>
    %13 = arith.cmpi slt, %11, %12 : vector<128x1xi32>
    %c0 = arith.constant 0 : index
    %c0_2 = arith.constant 0 : index
    %14 = vector.load %arg1[%c0, %c0_2] : memref<1x128xi32, #tpu.memory_space<vmem>>, vector<1x128xi32>
    %15 = tpu.iota {dimensions = array<i32: 0>} : vector<3x128xi32>
    %16 = vector.broadcast %14 : vector<1x128xi32> to vector<3x128xi32>
    %17 = arith.cmpi eq, %16, %15 : vector<3x128xi32>
    %18 = vector.broadcast %8 : vector<1x128xi1> to vector<3x128xi1>
    %19 = arith.andi %17, %18 : vector<3x128xi1>
    %c0_3 = arith.constant 0 : index
    %c0_4 = arith.constant 0 : index
    %20 = vector.load %arg2[%c0_3, %c0_4] : memref<3x1xf32, #tpu.memory_space<vmem>>, vector<3x1xf32>
    %cst = arith.constant 0.000000e+00 : f32
    %21 = vector.shape_cast %20 : vector<3x1xf32> to vector<3x1xf32>
    %22 = vector.broadcast %21 : vector<3x1xf32> to vector<3x128xf32>
    %23 = vector.broadcast %cst : f32 to vector<3x128xf32>
    %24 = arith.select %19, %22, %23 : vector<3x128xi1>, vector<3x128xf32>
    %c0_5 = arith.constant 0 : index
    %c0_6 = arith.constant 0 : index
    %25 = vector.load %arg3[%c0_5, %c0_6] : memref<128x32xf32, #tpu.memory_space<vmem>>, vector<128x32xf32>
    %cst_7 = arith.constant 0.000000e+00 : f32
    %26 = vector.shape_cast %13 : vector<128x1xi1> to vector<128x1xi1>
    %27 = vector.broadcast %26 : vector<128x1xi1> to vector<128x32xi1>
    %28 = vector.broadcast %cst_7 : f32 to vector<128x32xf32>
    %29 = arith.select %27, %25, %28 : vector<128x32xi1>, vector<128x32xf32>
    %c0_8 = arith.constant 0 : index
    %c0_9 = arith.constant 0 : index
    %30 = vector.load %arg4[%c0_8, %c0_9] : memref<128x32xf32, #tpu.memory_space<vmem>>, vector<128x32xf32>
    %cst_10 = arith.constant 0.000000e+00 : f32
    %31 = vector.shape_cast %13 : vector<128x1xi1> to vector<128x1xi1>
    %32 = vector.broadcast %31 : vector<128x1xi1> to vector<128x32xi1>
    %33 = vector.broadcast %cst_10 : f32 to vector<128x32xf32>
    %34 = arith.select %32, %30, %33 : vector<128x32xi1>, vector<128x32xf32>
    %c0_11 = arith.constant 0 : index
    %c0_12 = arith.constant 0 : index
    %35 = vector.load %arg13[%c0_11, %c0_12] : memref<3x32xf32, #tpu.memory_space<vmem>>, vector<3x32xf32>
    %cst_13 = arith.constant dense<0.000000e+00> : vector<3x32xf32>
    %36 = tpu.matmul %24, %29, %cst_13 {dimension_numbers = #tpu.dot_dimension_numbers<[1], [0], [0], [1], [0, 0, 1, 1], [], []>} : vector<3x128xf32>, vector<128x32xf32>, vector<3x32xf32> -> vector<3x32xf32>
    %37 = arith.addf %35, %36 : vector<3x32xf32>
    %c0_14 = arith.constant 0 : index
    %c0_15 = arith.constant 0 : index
    %38 = vector.load %arg13[%c0_14, %c0_15] : memref<3x32xf32, #tpu.memory_space<vmem>>, vector<3x32xf32>
    tpu.vector_store %arg13[%c0_14, %c0_15], %37 {strides = array<i32>} : memref<3x32xf32, #tpu.memory_space<vmem>>, vector<3x32xf32>,
    %c0_16 = arith.constant 0 : index
    %c0_17 = arith.constant 0 : index
    %39 = vector.load %arg14[%c0_16, %c0_17] : memref<3x32xf32, #tpu.memory_space<vmem>>, vector<3x32xf32>
    %cst_18 = arith.constant dense<0.000000e+00> : vector<3x32xf32>
    %40 = tpu.matmul %24, %34, %cst_18 {dimension_numbers = #tpu.dot_dimension_numbers<[1], [0], [0], [1], [0, 0, 1, 1], [], []>} : vector<3x128xf32>, vector<128x32xf32>, vector<3x32xf32> -> vector<3x32xf32>
    %41 = arith.addf %39, %40 : vector<3x32xf32>
    %c0_19 = arith.constant 0 : index
    %c0_20 = arith.constant 0 : index
    %42 = vector.load %arg14[%c0_19, %c0_20] : memref<3x32xf32, #tpu.memory_space<vmem>>, vector<3x32xf32>
    tpu.vector_store %arg14[%c0_19, %c0_20], %41 {strides = array<i32>} : memref<3x32xf32, #tpu.memory_space<vmem>>, vector<3x32xf32>,
    %c2_i32 = arith.constant 2 : i32
    %43 = arith.cmpi eq, %arg0, %c2_i32 : i32
    %44 = arith.extui %43 : i1 to i32
    %c0_i32_21 = arith.constant 0 : i32
    %45 = arith.cmpi ne, %44, %c0_i32_21 : i32
    scf.if %45 {
      %c0_22 = arith.constant 0 : index
      %c0_23 = arith.constant 0 : index
      %46 = vector.load %arg13[%c0_22, %c0_23] : memref<3x32xf32, #tpu.memory_space<vmem>>, vector<3x32xf32>
      %c0_24 = arith.constant 0 : index
      %c0_25 = arith.constant 0 : index
      %47 = vector.load %arg5[%c0_24, %c0_25] : memref<32x32xf32, #tpu.memory_space<vmem>>, vector<32x32xf32>
      %cst_26 = arith.constant dense<0.000000e+00> : vector<3x32xf32>
      %48 = tpu.matmul %46, %47, %cst_26 {dimension_numbers = #tpu.dot_dimension_numbers<[1], [0], [0], [1], [0, 0, 1, 1], [], []>} : vector<3x32xf32>, vector<32x32xf32>, vector<3x32xf32> -> vector<3x32xf32>
      %c0_27 = arith.constant 0 : index
      %c0_28 = arith.constant 0 : index
      %49 = vector.load %arg14[%c0_27, %c0_28] : memref<3x32xf32, #tpu.memory_space<vmem>>, vector<3x32xf32>
      %c0_29 = arith.constant 0 : index
      %c0_30 = arith.constant 0 : index
      %50 = vector.load %arg6[%c0_29, %c0_30] : memref<32x32xf32, #tpu.memory_space<vmem>>, vector<32x32xf32>
      %cst_31 = arith.constant dense<0.000000e+00> : vector<3x32xf32>
      %51 = tpu.matmul %49, %50, %cst_31 {dimension_numbers = #tpu.dot_dimension_numbers<[1], [0], [0], [1], [0, 0, 1, 1], [], []>} : vector<3x32xf32>, vector<32x32xf32>, vector<3x32xf32> -> vector<3x32xf32>
      %52 = arith.addf %48, %51 : vector<3x32xf32>
      %c0_32 = arith.constant 0 : index
      %c0_33 = arith.constant 0 : index
      %53 = vector.load %arg7[%c0_32, %c0_33] : memref<1x32xf32, #tpu.memory_space<vmem>>, vector<1x32xf32>
      %54 = vector.broadcast %53 : vector<1x32xf32> to vector<3x32xf32>
      %55 = arith.addf %52, %54 : vector<3x32xf32>
      %cst_34 = arith.constant 0.000000e+00 : f32
      %56 = vector.broadcast %cst_34 : f32 to vector<3x32xf32>
      %57 = arith.maximumf %55, %56 : vector<3x32xf32>
      %c0_35 = arith.constant 0 : index
      %c0_36 = arith.constant 0 : index
      %58 = vector.load %arg8[%c0_35, %c0_36] : memref<32x32xf32, #tpu.memory_space<vmem>>, vector<32x32xf32>
      %cst_37 = arith.constant dense<0.000000e+00> : vector<3x32xf32>
      %59 = tpu.matmul %57, %58, %cst_37 {dimension_numbers = #tpu.dot_dimension_numbers<[1], [0], [0], [1], [0, 0, 1, 1], [], []>} : vector<3x32xf32>, vector<32x32xf32>, vector<3x32xf32> -> vector<3x32xf32>
      %c0_38 = arith.constant 0 : index
      %c0_39 = arith.constant 0 : index
      %60 = vector.load %arg9[%c0_38, %c0_39] : memref<1x32xf32, #tpu.memory_space<vmem>>, vector<1x32xf32>
      %61 = vector.broadcast %60 : vector<1x32xf32> to vector<3x32xf32>
      %62 = arith.addf %59, %61 : vector<3x32xf32>
      %cst_40 = arith.constant 0.000000e+00 : f32
      %63 = vector.broadcast %cst_40 : f32 to vector<3x32xf32>
      %64 = arith.maximumf %62, %63 : vector<3x32xf32>
      %c0_41 = arith.constant 0 : index
      %c0_42 = arith.constant 0 : index
      %65 = vector.load %arg10[%c0_41, %c0_42] : memref<1x32xf32, #tpu.memory_space<vmem>>, vector<1x32xf32>
      %66 = vector.broadcast %65 : vector<1x32xf32> to vector<3x32xf32>
      %67 = arith.mulf %64, %66 : vector<3x32xf32>
      %cst_43 = arith.constant dense<0.000000e+00> : vector<3xf32>
      %68 = vector.multi_reduction <add>, %67, %cst_43 [1] : vector<3x32xf32> to vector<3xf32>
      %69 = vector.shape_cast %68 : vector<3xf32> to vector<3x1xf32>
      %c0_44 = arith.constant 0 : index
      %c0_45 = arith.constant 0 : index
      %70 = vector.load %arg11[%c0_44, %c0_45] : memref<1x1xf32, #tpu.memory_space<vmem>>, vector<1x1xf32>
      %71 = vector.broadcast %70 : vector<1x1xf32> to vector<3x1xf32>
      %72 = arith.addf %69, %71 : vector<3x1xf32>
      %73 = arith.negf %72 : vector<3x1xf32>
      %74 = math.exp %73 : vector<3x1xf32>
      %cst_46 = arith.constant 1.000000e+00 : f32
      %75 = vector.broadcast %cst_46 : f32 to vector<3x1xf32>
      %76 = arith.addf %75, %74 : vector<3x1xf32>
      %77 = arith.divf %75, %76 : vector<3x1xf32>
      %c0_47 = arith.constant 0 : index
      %c0_48 = arith.constant 0 : index
      %78 = vector.load %arg12[%c0_47, %c0_48] : memref<3x1xf32, #tpu.memory_space<vmem>>, vector<3x1xf32>
      tpu.vector_store %arg12[%c0_47, %c0_48], %77 {strides = array<i32>} : memref<3x1xf32, #tpu.memory_space<vmem>>, vector<3x1xf32>,
    } else {
    }
    return
  }
  func.func @transform_0(%arg0: i32) -> (i32, i32) {
    %c0_i32 = arith.constant 0 : i32
    %c0_i32_0 = arith.constant 0 : i32
    return %c0_i32, %arg0 : i32, i32
  }
  func.func @transform_1(%arg0: i32) -> (i32, i32) {
    %c0_i32 = arith.constant 0 : i32
    %c0_i32_0 = arith.constant 0 : i32
    %c0_i32_1 = arith.constant 0 : i32
    return %c0_i32, %c0_i32_0 : i32, i32
  }
  func.func @transform_2(%arg0: i32) -> (i32, i32) {
    %c0_i32 = arith.constant 0 : i32
    %c0_i32_0 = arith.constant 0 : i32
    return %arg0, %c0_i32 : i32, i32
  }
  func.func @transform_3(%arg0: i32) -> (i32, i32) {
    %c0_i32 = arith.constant 0 : i32
    %c0_i32_0 = arith.constant 0 : i32
    return %arg0, %c0_i32 : i32, i32
  }
  func.func @transform_4(%arg0: i32) -> (i32, i32) {
    %c0_i32 = arith.constant 0 : i32
    %c0_i32_0 = arith.constant 0 : i32
    %c0_i32_1 = arith.constant 0 : i32
    return %c0_i32, %c0_i32_0 : i32, i32
  }
  func.func @transform_5(%arg0: i32) -> (i32, i32) {
    %c0_i32 = arith.constant 0 : i32
    %c0_i32_0 = arith.constant 0 : i32
    %c0_i32_1 = arith.constant 0 : i32
    return %c0_i32, %c0_i32_0 : i32, i32
  }
  func.func @transform_6(%arg0: i32) -> (i32, i32) {
    %c0_i32 = arith.constant 0 : i32
    %c0_i32_0 = arith.constant 0 : i32
    %c0_i32_1 = arith.constant 0 : i32
    return %c0_i32, %c0_i32_0 : i32, i32
  }
  func.func @transform_7(%arg0: i32) -> (i32, i32) {
    %c0_i32 = arith.constant 0 : i32
    %c0_i32_0 = arith.constant 0 : i32
    %c0_i32_1 = arith.constant 0 : i32
    return %c0_i32, %c0_i32_0 : i32, i32
  }
  func.func @transform_8(%arg0: i32) -> (i32, i32) {
    %c0_i32 = arith.constant 0 : i32
    %c0_i32_0 = arith.constant 0 : i32
    %c0_i32_1 = arith.constant 0 : i32
    return %c0_i32, %c0_i32_0 : i32, i32
  }
  func.func @transform_9(%arg0: i32) -> (i32, i32) {
    %c0_i32 = arith.constant 0 : i32
    %c0_i32_0 = arith.constant 0 : i32
    %c0_i32_1 = arith.constant 0 : i32
    return %c0_i32, %c0_i32_0 : i32, i32
  }
  func.func @transform_10(%arg0: i32) -> (i32, i32) {
    %c0_i32 = arith.constant 0 : i32
    %c0_i32_0 = arith.constant 0 : i32
    %c0_i32_1 = arith.constant 0 : i32
    return %c0_i32, %c0_i32_0 : i32, i32
  }
  func.func @transform_11(%arg0: i32) -> (i32, i32) {
    %c0_i32 = arith.constant 0 : i32
    %c0_i32_0 = arith.constant 0 : i32
    %c0_i32_1 = arith.constant 0 : i32
    return %c0_i32, %c0_i32_0 : i32, i32
  }
}

</mosaic_0001>

<bundles_post_ra>
// kernel: satisfiability_readout.1
= control target key start
LH: loop header
LB: loop body
LE: loop exit
PB: predicated region body
PF: predicated region fallthrough
CT: control target
= control target key end

     0   :  { %s996_s19 = smov 0   ;;  %s1165_s0 = inlined_call_operand.vmem [shape: s32[1,304], index: 0, kind: input, shape index: {}]   ;;  %s1166_s1 = inlined_call_operand.vmem [shape: f32[3,1], index: 1, kind: input, shape index: {}]   ;;  %s1167_s2 = inlined_call_operand.vmem [shape: f32[304,32], index: 2, kind: input, shape index: {}]   ;;  %s1168_s3 = inlined_call_operand.vmem [shape: f32[304,32], index: 3, kind: input, shape index: {}]   ;;  %s1169_s4 = inlined_call_operand.vmem [shape: f32[32,32], index: 4, kind: input, shape index: {}]   ;;  %s1170_s5 = inlined_call_operand.vmem [shape: f32[32,32], index: 5, kind: input, shape index: {}]   ;;  %s1171_s6 = inlined_call_operand.vmem [shape: f32[1,32], index: 6, kind: input, shape index: {}]   ;;  %s1172_s7 = inlined_call_operand.vmem [shape: f32[32,32], index: 7, kind: input, shape index: {}]   ;;  %s1173_s8 = inlined_call_operand.vmem [shape: f32[1,32], index: 8, kind: input, shape index: {}]   ;;  %s1174_s9 = inlined_call_operand.vmem [shape: f32[1,32], index: 9, kind: input, shape index: {}]   ;;  %s1175_s10 = inlined_call_operand.<no memory space> [shape: f32[1,1], index: 10, kind: input, shape index: {}]   ;;  %s1176_s11 = inlined_call_operand.vmem [shape: f32[3,1], index: 11, kind: output, shape index: {}]  }
   0x1   :  { %v16_v0 = vstv %s1175_s10 }
   0x2   :  { %17 = vst [vmem:[#allocation4] sm:$0x1] %v16_v0 }
   0x3 LB: > { %s1002_s20 = sadd.s32 4294967295, %s929_s19   ;;  %p855_p0 = scmp.ge.s32.totalorder %s929_s19, 1  ;;  %s929_s19 = sphi %s996_s19, %s23_s19  }
   0x4   : > { %p370_p1 = scmp.lt.s32.totalorder %s929_s19, 4 }
   0x6   : > { %p371_p2 = pnand %p855_p0, %p370_p1 }
   0x7   : > { %p421_p3 = scmp.lt.s32.totalorder (!%p371_p2), %s1002_s20, 2  ;;  %s856_s10 = sshll.u32 (!%p371_p2), %s1002_s20, 4 }
   0x8   : > { %374 = sbr.rel (%p371_p2) target bundleno = 696 (0x2b8), region = 64  ;;  %p429_p4 = scmp.lt.s32.totalorder (!%p371_p2), %s856_s10, 37 }
   0x9   : > { %p860_p5 = scmp.ne.s32.totalorder (!%p371_p2), %s1002_s20, 0 }
   0xd   : > { %s1009_s21 = scalar_select %p421_p3, %s1002_s20, 2 }
   0xe   : > { %s1178_s10 = smov (!%p429_p4, %s856_s10), 37  ;;  %455 = sbr.rel (%p860_p5) target bundleno = 22 (0x16), region = 68 }
   0xf   : > { %s423_s24 = scalar_lea.vmem %s1165_s0, %s1009_s21  ;;  %s857_s25 = sshll.u32 %s1178_s10, 3 }
  0x10   : > { %s1018_s28 = scalar_lea.vmem %s1167_s2, %s857_s25  ;;  %s1023_s12 = scalar_lea.vmem %s1168_s3, %s857_s25 }
  0x13   : > { %vm456_vm0 = vcmask 256000   ;;  %v931_v1 = vmov 0.0  }
  0x14   : > { %457 = vst.msk [vmem:[#allocation2] sm:$0x7] %vm456_vm0, %v931_v1 }
  0x15   : > { %458 = vst.msk [vmem:[#allocation3] sm:$0x7] %vm456_vm0, %v931_v1 }
  0x16 PF: > { %v520_v2 = vld [vmem:[%s1166_s1] sm:$0x7]  ;;  %s861_s15 = sshll.u32 %s1002_s20, 7  ;;  %v460_v3 = vlaneseq  ;;  %v932_v4 = vmov 0   ;;  %v542_v12 = vld [vmem:[%s1018_s28 + $0x78] sm:$0xff]  ;;  %v541_v17 = vld [vmem:[%s1018_s28 + $0x70] sm:$0xff] }
  0x17   : > { %913 = vset.pattern.permute.xlu0 %v932_v4  ;;  %v1033_v6 = vstv %s861_s15  ;;  %v606_v13 = vld [vmem:[%s1023_s12 + $0x78] sm:$0xff]  ;;  %v605_v18 = vld [vmem:[%s1023_s12 + $0x70] sm:$0xff]  ;;  %v540_v21 = vld [vmem:[%s1018_s28 + $0x68] sm:$0xff]  ;;  %p896_p6 = scmp.ne.s32.totalorder %s1002_s20, 2 }
  0x18   : > { %523 = vperm.xlu0 %913, %v520_v2   ;;  %v1031_v5 = vshrl.u32 %v460_v3, 7  ;;  %v604_v22 = vld [vmem:[%s1023_s12 + $0x68] sm:$0xff]  ;;  %v539_v25 = vld [vmem:[%s1018_s28 + $0x60] sm:$0xff]  ;;  %v538_v29 = vld [vmem:[%s1018_s28 + $0x58] sm:$0xff] }
  0x19   : > { %v603_v26 = vld [vmem:[%s1023_s12 + $0x60] sm:$0xff]  ;;  %v602_v30 = vld [vmem:[%s1023_s12 + $0x58] sm:$0xff]  ;;  %v537_v33 = vld [vmem:[%s1018_s28 + $0x50] sm:$0xff] }
  0x1a   : > { %v481_v7 = vadd.s32 120, %v1031_v5  ;;  %v480_v8 = vadd.s32 112, %v1031_v5  ;;  %v479_v9 = vadd.s32 104, %v1031_v5  ;;  %v478_v10 = vadd.s32 96, %v1031_v5  ;;  %v601_v34 = vld [vmem:[%s1023_s12 + $0x50] sm:$0xff]  ;;  %v536_v37 = vld [vmem:[%s1018_s28 + $0x48] sm:$0xff] }
  0x1b   : > { %v477_v16 = vadd.s32 88, %v1031_v5  ;;  %v476_v20 = vadd.s32 80, %v1031_v5  ;;  %v475_v24 = vadd.s32 72, %v1031_v5  ;;  %v474_v28 = vadd.s32 64, %v1031_v5  ;;  %v600_v38 = vld [vmem:[%s1023_s12 + $0x48] sm:$0xff]  ;;  %v535_v41 = vld [vmem:[%s1018_s28 + $0x40] sm:$0xff] }
  0x1c   : > { %v497_v11 = vadd.s32 %v481_v7, %v1033_v6  ;;  %v496_v14 = vadd.s32 %v480_v8, %v1033_v6  ;;  %v495_v15 = vadd.s32 %v479_v9, %v1033_v6  ;;  %v494_v19 = vadd.s32 %v478_v10, %v1033_v6  ;;  %v599_v42 = vld [vmem:[%s1023_s12 + $0x40] sm:$0xff]  ;;  %v534_v45 = vld [vmem:[%s1018_s28 + $0x38] sm:$0xff]  ;;  %v533_v49 = vld [vmem:[%s1018_s28 + $0x30] sm:$0xff] }
  0x1d   : > { %v493_v23 = vadd.s32 %v477_v16, %v1033_v6  ;;  %v492_v27 = vadd.s32 %v476_v20, %v1033_v6  ;;  %v491_v31 = vadd.s32 %v475_v24, %v1033_v6  ;;  %v473_v32 = vadd.s32 56, %v1031_v5  ;;  %v598_v46 = vld [vmem:[%s1023_s12 + $0x38] sm:$0xff]  ;;  %v597_v50 = vld [vmem:[%s1023_s12 + $0x30] sm:$0xff]  ;;  %v532_v53 = vld [vmem:[%s1018_s28 + $0x28] sm:$0xff] }
  0x1e   : > { %vm513_vm1 = vcmp.lt.s32.totalorder %v497_v11, 304  ;;  %vm512_vm2 = vcmp.lt.s32.totalorder %v496_v14, 304  ;;  %vm511_vm3 = vcmp.lt.s32.totalorder %v495_v15, 304  ;;  %vm510_vm4 = vcmp.lt.s32.totalorder %v494_v19, 304  ;;  %v596_v54 = vld [vmem:[%s1023_s12 + $0x28] sm:$0xff]  ;;  %v531_v57 = vld [vmem:[%s1018_s28 + $0x20] sm:$0xff] }
  0x1f   : > { %862 = vmatpush.msk.msra.mxu0 %vm513_vm1, %v542_v12  ;;  %879 = vmatpush.msk.msra.mxu1 %vm513_vm1, %v606_v13  ;;  %vm509_vm5 = vcmp.lt.s32.totalorder %v493_v23, 304  ;;  %vm508_vm6 = vcmp.lt.s32.totalorder %v492_v27, 304  ;;  %v490_v35 = vadd.s32 %v474_v28, %v1033_v6  ;;  %v472_v36 = vadd.s32 48, %v1031_v5  ;;  %v595_v58 = vld [vmem:[%s1023_s12 + $0x20] sm:$0xff]  ;;  %v530_v60 = vld [vmem:[%s1018_s28 + $0x18] sm:$0xff]  ;;  %v529_v63 = vld [vmem:[%s1018_s28 + $0x10] sm:$0xff] }
  0x20   : > { %vm507_vm7 = vcmp.lt.s32.totalorder %v491_v31, 304  ;;  %v489_v39 = vadd.s32 %v473_v32, %v1033_v6  ;;  %v471_v40 = vadd.s32 40, %v1031_v5  ;;  %v470_v44 = vadd.s32 32, %v1031_v5  ;;  %v594_v61 = vld [vmem:[%s1023_s12 + $0x18] sm:$0xff]  ;;  %v593_v0 = vld [vmem:[%s1023_s12 + $0x10] sm:$0xff]  ;;  %v528_v1 = vld [vmem:[%s1018_s28 + $0x8] sm:$0xff] }
  0x21   : > { %863 = vmatpush.msk.msra.mxu0 %vm512_vm2, %v541_v17  ;;  %880 = vmatpush.msk.msra.mxu1 %vm512_vm2, %v605_v18  ;;  %vm506_vm8 = vcmp.lt.s32.totalorder %v490_v35, 304  ;;  %v488_v43 = vadd.s32 %v472_v36, %v1033_v6  ;;  %v469_v48 = vadd.s32 24, %v1031_v5  ;;  %v468_v52 = vadd.s32 16, %v1031_v5  ;;  %v592_v2 = vld [vmem:[%s1023_s12 + $0x8] sm:$0xff]  ;;  %v527_v7 = vld [vmem:[%s1018_s28] sm:$0xff] }
  0x22   : > { %vm505_vm9 = vcmp.lt.s32.totalorder %v489_v39, 304  ;;  %v487_v47 = vadd.s32 %v471_v40, %v1033_v6  ;;  %v486_v51 = vadd.s32 %v470_v44, %v1033_v6  ;;  %v467_v56 = vadd.s32 8, %v1031_v5  ;;  %v591_v8 = vld [vmem:[%s1023_s12] sm:$0xff] }
  0x23   : > { %864 = vmatpush.msk.msra.mxu0 %vm511_vm3, %v540_v21  ;;  %881 = vmatpush.msk.msra.mxu1 %vm511_vm3, %v604_v22  ;;  %vm504_vm10 = vcmp.lt.s32.totalorder %v488_v43, 304  ;;  %v485_v55 = vadd.s32 %v469_v48, %v1033_v6  ;;  %v484_v59 = vadd.s32 %v468_v52, %v1033_v6  ;;  %v482_v4 = vadd.s32 %v1031_v5, %v1033_v6  ;;  %v914_v11 = vld [vmem:[%s423_s24] ss:$0 sm:$0xff]  ;;  %v647_v14 = vld [vmem:[#allocation3] sm:$0x7] }
  0x24   : > { %vm503_vm11 = vcmp.lt.s32.totalorder %v487_v47, 304  ;;  %vm502_vm12 = vcmp.lt.s32.totalorder %v486_v51, 304  ;;  %v483_v62 = vadd.s32 %v467_v56, %v1033_v6  ;;  %v461_v9 = vand.u32 127, %v460_v3  ;;  %v623_v13 = vld [vmem:[#allocation2] sm:$0x7] }
  0x25   : > { %865 = vmatpush.msk.msra.mxu0 %vm510_vm4, %v539_v25  ;;  %882 = vmatpush.msk.msra.mxu1 %vm510_vm4, %v603_v26  ;;  %vm501_vm13 = vcmp.lt.s32.totalorder %v485_v55, 304  ;;  %vm500_vm14 = vcmp.lt.s32.totalorder %v484_v59, 304  ;;  %vm498_vm0 = vcmp.lt.s32.totalorder %v482_v4, 304  ;;  %vm516_vm2 = vcmp.eq.s32.totalorder %v914_v11, %v1031_v5 }
  0x26   : > { %vm499_vm15 = vcmp.lt.s32.totalorder %v483_v62, 304  ;;  %v463_v10 = vadd.s32 %v1033_v6, %v461_v9  ;;  %vm645_vm4 = vcmask 256000  }
  0x27   : > { %866 = vmatpush.msk.msra.mxu0 %vm509_vm5, %v538_v29  ;;  %883 = vmatpush.msk.msra.mxu1 %vm509_vm5, %v602_v30 }
  0x28   : > { %vm464_vm1 = vcmp.lt.s32.totalorder %v463_v10, 304 }
  0x29   : > { %867 = vmatpush.msk.msra.mxu0 %vm508_vm6, %v537_v33  ;;  %884 = vmatpush.msk.msra.mxu1 %vm508_vm6, %v601_v34  ;;  %vm519_vm3 = vmand %vm516_vm2, %vm464_vm1 }
  0x2b   : > { %868 = vmatpush.msk.msra.mxu0 %vm507_vm7, %v536_v37  ;;  %885 = vmatpush.msk.msra.mxu1 %vm507_vm7, %v600_v38 }
  0x2d   : > { %869 = vmatpush.msk.msra.mxu0 %vm506_vm8, %v535_v41  ;;  %886 = vmatpush.msk.msra.mxu1 %vm506_vm8, %v599_v42 }
  0x2f   : > { %870 = vmatpush.msk.msra.mxu0 %vm505_vm9, %v534_v45  ;;  %887 = vmatpush.msk.msra.mxu1 %vm505_vm9, %v598_v46 }
  0x31   : > { %871 = vmatpush.msk.msra.mxu0 %vm504_vm10, %v533_v49  ;;  %888 = vmatpush.msk.msra.mxu1 %vm504_vm10, %v597_v50 }
  0x33   : > { %872 = vmatpush.msk.msra.mxu0 %vm503_vm11, %v532_v53  ;;  %889 = vmatpush.msk.msra.mxu1 %vm503_vm11, %v596_v54 }
  0x35   : > { %873 = vmatpush.msk.msra.mxu0 %vm502_vm12, %v531_v57  ;;  %890 = vmatpush.msk.msra.mxu1 %vm502_vm12, %v595_v58 }
  0x37   : > { %874 = vmatpush.msk.msra.mxu0 %vm501_vm13, %v530_v60  ;;  %891 = vmatpush.msk.msra.mxu1 %vm501_vm13, %v594_v61 }
  0x39   : > { %875 = vmatpush.msk.msra.mxu0 %vm500_vm14, %v529_v63  ;;  %892 = vmatpush.msk.msra.mxu1 %vm500_vm14, %v593_v0 }
  0x3b   : > { %876 = vmatpush.msk.msra.mxu0 %vm499_vm15, %v528_v1  ;;  %893 = vmatpush.msk.msra.mxu1 %vm499_vm15, %v592_v2 }
  0x3d   : > { %877 = vmatpush.msk.msra.mxu0 %vm498_vm0, %v527_v7  ;;  %894 = vmatpush.msk.msra.mxu1 %vm498_vm0, %v591_v8 }
  0x8a   : > { %v524_v12 = vpop.permute.xlu0 %523 }
  0x8b   : > { %878 = vmatmul.msk.f32.vlgmr.msra.gmra.mxu0 %vm519_vm3, %v524_v12  ;;  %895 = vmatmul.msk.f32.vlgmr.msra.gmra.mxu1 %vm519_vm3, %v524_v12 }
 0x108   : > { %v641_v15 = vpop.f32.mrf.mxu0  ;;  %v665_v16 = vpop.f32.mrf.mxu1  ;;  %673 = sbr.rel (%p896_p6) target bundleno = 696 (0x2b8), region = 72 }
 0x109   : > { %v644_v3 = vadd.f32 %v641_v15, %v623_v13  ;;  %v668_v17 = vadd.f32 %v665_v16, %v647_v14 }
 0x10b   : > { %646 = vst.msk [vmem:[#allocation2] sm:$0x7] %vm645_vm4, %v644_v3 }
 0x10c   : > { %669 = vst.msk [vmem:[#allocation3] sm:$0x7] %vm645_vm4, %v668_v17 }
 0x10d   : > { %v683_v5 = vld [vmem:[%s1170_s5 + $0x18] sm:$0xff]  ;;  %v682_v18 = vld [vmem:[%s1170_s5 + $0x10] sm:$0xff]  ;;  %v681_v20 = vld [vmem:[%s1170_s5 + $0x8] sm:$0xff]  ;;  %vm684_vm5 = vcmask 261120   ;;  %vm801_vm9 = vcmask 2048  }
 0x10e   : > { %v678_v6 = vld [vmem:[%s1169_s4 + $0x18] sm:$0xff]  ;;  %700 = vmatpush.msra.mxu0 %v683_v5  ;;  %v677_v19 = vld [vmem:[%s1169_s4 + $0x10] sm:$0xff]  ;;  %v676_v21 = vld [vmem:[%s1169_s4 + $0x8] sm:$0xff] }
 0x10f   : > { %723 = vmatpush.msra.mxu1 %v678_v6  ;;  %v680_v22 = vld [vmem:[%s1170_s5] sm:$0xff]  ;;  %v740_v26 = vld [vmem:[%s1172_s7 + $0x18] sm:$0xff]  ;;  %v739_v27 = vld [vmem:[%s1172_s7 + $0x10] sm:$0xff] }
 0x110   : > { %701 = vmatpush.msra.mxu0 %v682_v18  ;;  %v675_v23 = vld [vmem:[%s1169_s4] sm:$0xff]  ;;  %760 = vmatpush.msra.mxu2 %v740_v26  ;;  %v738_v28 = vld [vmem:[%s1172_s7 + $0x8] sm:$0xff] }
 0x111   : > { %724 = vmatpush.msra.mxu1 %v677_v19  ;;  %v737_v29 = vld [vmem:[%s1172_s7] sm:$0xff]  ;;  %v918_v43 = vld [vmem:[#allocation4] ss:$0 sm:$0xff] }
 0x112   : > { %702 = vmatpush.msra.mxu0 %v681_v20  ;;  %v674_v25 = vld [vmem:[#allocation2] sm:$0x7]  ;;  %761 = vmatpush.msra.mxu2 %v739_v27 }
 0x113   : > { %725 = vmatpush.msra.mxu1 %v676_v21  ;;  %v679_v24 = vld [vmem:[#allocation3] sm:$0x7]  ;;  %v915_v30 = vld [vmem:[%s1171_s6] ss:$0 sm:$0xff] }
 0x114   : > { %703 = vmatpush.msra.mxu0 %v680_v22  ;;  %762 = vmatpush.msra.mxu2 %v738_v28  ;;  %v916_v36 = vld [vmem:[%s1173_s8] ss:$0 sm:$0xff] }
 0x115   : > { %726 = vmatpush.msra.mxu1 %v675_v23  ;;  %897 = vmatmul.msk.f32.vlgmr.msra.gmra.mxu0 %vm684_vm5, %v679_v24  ;;  %v917_v39 = vld [vmem:[%s1174_s9] ss:$0 sm:$0xff] }
 0x116   : > { %898 = vmatmul.msk.f32.vlgmr.msra.gmra.mxu1 %vm684_vm5, %v674_v25  ;;  %763 = vmatpush.msra.mxu2 %v737_v29 }
 0x192   : > { %v705_v31 = vpop.f32.mrf.mxu0 }
 0x193   : > { %v728_v32 = vpop.f32.mrf.mxu1 }
 0x194   : > { %v729_v33 = vadd.f32 %v728_v32, %v705_v31 }
 0x196   : > { %v735_v34 = vadd.f32 %v915_v30, %v729_v33 }
 0x198   : > { %v736_v35 = vmax.f32 %v735_v34, 0.0 }
 0x19a   : > { %899 = vmatmul.msk.f32.vlgmr.msra.gmra.mxu2 %vm684_vm5, %v736_v35 }
 0x21d   : > { %v765_v37 = vpop.f32.mrf.mxu2 }
 0x21e   : > { %v766_v38 = vadd.f32 %v916_v36, %v765_v37 }
 0x220   : > { %v768_v40 = vmax.f32 %v766_v38, 0.0 }
 0x222   : > { %v773_v41 = vmul.f32 %v917_v39, %v768_v40 }
 0x224   : > { %v774_v42 = vsel %vm645_vm4, %v773_v41, 0.0 }
 0x225   : > { %775 = vadd.xlane.f32.xlu0 %v774_v42 }
 0x298   : > { %v776_v44 = vpop.xlane.xlu0 %775 }
 0x299   : > { %v781_v45 = vadd.f32 %v918_v43, %v776_v44 }
 0x29b   : > { %v900_v46 = vmul.f32 -1.442695, %v781_v45 }
 0x29d   : > { %919 = vpow2.f32 %v900_v46 }
 0x2a3   : > { %v920_v47 = vpop.eup %919 }
 0x2a4   : > { %v785_v48 = vadd.f32 1.0, %v920_v47 }
 0x2a6   : > { %921 = vrcp.f32 %v785_v48  ;;  %v797_v52 = vand.u32 2147483648, %v785_v48  ;;  %v795_v54 = vand.u32 2147483647, %v785_v48  ;;  %vm791_vm7 = vweird.f32 %v785_v48 }
 0x2a8   : > { %v798_v56 = vor.u32 1.1754944e-38, %v797_v52  ;;  %vm796_vm10 = vcmp.eq.f32.partialorder %v795_v54, 8.507059e+37 }
 0x2ac   : > { %v922_v49 = vpop.eup %921 }
 0x2ad   : > { %v787_v50 = vmul.f32 %v922_v49, %v785_v48  ;;  %vm792_vm6 = vweird.f32 %v922_v49 }
 0x2ae   : > { %vm793_vm8 = vmor %vm791_vm7, %vm792_vm6 }
 0x2af   : > { %v788_v51 = vsub.f32 1.0, %v787_v50 }
 0x2b1   : > { %v789_v53 = vmul.f32 %v922_v49, %v788_v51 }
 0x2b3   : > { %v790_v55 = vadd.f32 %v922_v49, %v789_v53 }
 0x2b5   : > { %v794_v57 = vsel %vm793_vm8, %v922_v49, %v790_v55 }
 0x2b6   : > { %v799_v58 = vsel %vm796_vm10, %v798_v56, %v794_v57 }
 0x2b7   : > { %802 = vst.msk [vmem:[%s1176_s11] sm:$0x7] %vm801_vm9, %v799_v58 }
 0x2b8 PF: > { %s23_s19 = sadd.s32 1, %s929_s19  }
 0x2b9   : > { %p20_p7 = scmp.ge.s32.totalorder %s23_s19, 5  }
 0x2bb   :  { %22 = sbr.rel (!%p20_p7) target bundleno = 3 (0x3), region = 104 }

</bundles_post_ra>
